<compile_context>
chip_gen: v7x
topology: tpu7x:2x2x1
jax: 0.10.0
libtpu: 0.0.40
codegen_flags: <defaults>
</compile_context>

<pallas_src>
import jax
import jax.numpy as jnp
from jax.experimental import pallas as pl
from jax.experimental.pallas import tpu as pltpu


def _normalize_kernel(mean_ref, inv_std_ref, x_ref, o_ref):
    # mean_ref / inv_std_ref: full (R_pad, 1) VMEM-resident columns.
    # x_ref / o_ref: (rt, lt) tiles.
    rt = x_ref.shape[0]
    r0 = pl.program_id(0) * rt
    if rt % 8 == 0:
        r0 = pl.multiple_of(r0, 8)          # aligned sublane slice
    m = mean_ref[pl.ds(r0, rt), :]          # (rt, 1) -> broadcasts across lanes
    s = inv_std_ref[pl.ds(r0, rt), :]
    o_ref[...] = (x_ref[...] - m) * s


def _round_down(x, m):
    return (x // m) * m


def _round_up(x, m):
    return ((x + m - 1) // m) * m


def normalize_by_channel_mean_std(x, mean, std, *, donate_x=False):
    """(x - mean[c]) / std[c]; x is (N, C, H, W), mean/std are (C,)."""
    N, C, H, W = x.shape
    assert mean.shape == (C,) and std.shape == (C,)

    R = N * C                       # rows of the flattened view
    L = H * W                       # lane dimension
    itemsize = x.dtype.itemsize

    # ---- tile sizing -------------------------------------------------------
    # ~4 MiB per input tile: amortizes per-step overhead on v7x's fast HBM
    # while (with vmem_limit_bytes below) double-buffering safely everywhere.
    target_bytes = 4 * 1024 * 1024

    # Lane tile: full H*W when 8 rows of it fit the target, otherwise a
    # multiple of 128 (ragged lane tail is legal; OOB writes are discarded).
    if 8 * L * itemsize <= target_bytes or L <= 128:
        lt = L
    else:
        lt = _round_down(target_bytes // (8 * itemsize), 128)
        lt = max(128, min(lt, _round_down(L, 128)))
    num_lane_blocks = pl.cdiv(L, lt)

    # Row tile: multiple of 8 (ragged row tail is legal); rt == R only if R<8.
    if R < 8:
        rt = R
    else:
        rt = _round_down(max(8, target_bytes // max(lt * itemsize, 1)), 8)
        rt = max(8, min(rt, _round_up(R, 8)))
        if R >= 16:
            # Guarantee >= 2 row blocks so v7x's two TensorCores both get work.
            rt = min(rt, _round_up(pl.cdiv(R, 2), 8))
    num_row_blocks = pl.cdiv(R, rt)

    # ---- operands ----------------------------------------------------------
    x2 = x.reshape(R, L)

    # Per-row stats (row r -> channel r % C), padded so the in-kernel dynamic
    # slice of the resident column never reads out of bounds.
    R_pad = num_row_blocks * rt
    mean_rows = jnp.tile(mean.astype(x.dtype), N).reshape(R, 1)
    inv_std_rows = jnp.tile((1.0 / std).astype(x.dtype), N).reshape(R, 1)
    if R_pad > R:
        mean_rows = jnp.pad(mean_rows, ((0, R_pad - R), (0, 0)))
        inv_std_rows = jnp.pad(inv_std_rows, ((0, R_pad - R), (0, 0)),
                               constant_values=1.0)

    # ---- pallas_call -------------------------------------------------------
    stat_spec = pl.BlockSpec((R_pad, 1), lambda i, j: (0, 0))   # VMEM-resident
    tile_spec = pl.BlockSpec((rt, lt), lambda i, j: (i, j))

    call_kwargs = {}
    if donate_x:
        # Reuse x2's HBM buffer for the output (caller must not reuse x).
        call_kwargs["input_output_aliases"] = {2: 0}

    out2 = pl.pallas_call(
        _normalize_kernel,
        out_shape=jax.ShapeDtypeStruct((R, L), x.dtype),
        grid=(num_row_blocks, num_lane_blocks),
        in_specs=[stat_spec, stat_spec, tile_spec],
        out_specs=tile_spec,
        compiler_params=pltpu.CompilerParams(
            dimension_semantics=("parallel", "parallel"),
            vmem_limit_bytes=48 * 1024 * 1024,
        ),
        **call_kwargs,
    )(mean_rows, inv_std_rows, x2)

    return out2.reshape(N, C, H, W)


if __name__ == "__main__":
    key = jax.random.PRNGKey(0)
    N, C, H, W = 2, 4, 16, 16

    # Deterministic per-channel "buffers" (as registered in the PyTorch module).
    mean = jnp.array([0.4914, 0.4822, 0.4465, 0.5000], dtype=jnp.float32)
    std = jnp.array([0.2470, 0.2435, 0.2616, 0.2500], dtype=jnp.float32)

    x = jax.random.uniform(key, (N, C, H, W), dtype=jnp.float32)

    out = normalize_by_channel_mean_std(x, mean, std)
    out = jax.block_until_ready(out)

    # Reference check (same broadcasting as the PyTorch module).
    ref = (x - mean[None, :, None, None]) / std[None, :, None, None]
    assert out.shape == (N, C, H, W)
    assert jnp.allclose(out, ref, atol=1e-6, rtol=1e-5)

    print("KERNEL_OK")
</pallas_src>

<mosaic_0001>
module attributes {stable_mosaic.version = 11 : i64} {
  func.func @_normalize_kernel(%arg0: i32, %arg1: i32, %arg2: memref<8x1xf32, #tpu.memory_space<vmem>>, %arg3: memref<8x1xf32, #tpu.memory_space<vmem>>, %arg4: memref<8x256xf32, #tpu.memory_space<vmem>>, %arg5: memref<8x256xf32, #tpu.memory_space<vmem>>) attributes {dimension_semantics = [#tpu.dimension_semantics<parallel>, #tpu.dimension_semantics<parallel>], iteration_bounds = array<i64: 1, 1>, scalar_prefetch = 0 : i64, scratch_operands = 0 : i64, tpu.core_type = #tpu.core_type<tc>, window_params = [{pipeline_mode = #tpu.pipeline_mode<synchronous>, transform_indices = @transform_0, window_bounds = array<i64: 8, 1>}, {pipeline_mode = #tpu.pipeline_mode<synchronous>, transform_indices = @transform_1, window_bounds = array<i64: 8, 1>}, {transform_indices = @transform_2, window_bounds = array<i64: 8, 256>}, {transform_indices = @transform_3, window_bounds = array<i64: 8, 256>}]} {
    %c8_i32 = arith.constant 8 : i32
    %0 = arith.muli %arg0, %c8_i32 : i32
    %1 = tpu.assume_multiple %0, 8 : i32
    %2 = arith.index_cast %1 : i32 to index
    %c0 = arith.constant 0 : index
    %3 = vector.load %arg2[%2, %c0] : memref<8x1xf32, #tpu.memory_space<vmem>>, vector<8x1xf32>
    %4 = arith.index_cast %1 : i32 to index
    %c0_0 = arith.constant 0 : index
    %5 = vector.load %arg3[%4, %c0_0] : memref<8x1xf32, #tpu.memory_space<vmem>>, vector<8x1xf32>
    %c0_1 = arith.constant 0 : index
    %c0_2 = arith.constant 0 : index
    %6 = vector.load %arg4[%c0_1, %c0_2] : memref<8x256xf32, #tpu.memory_space<vmem>>, vector<8x256xf32>
    %7 = vector.broadcast %3 : vector<8x1xf32> to vector<8x256xf32>
    %8 = arith.subf %6, %7 : vector<8x256xf32>
    %9 = vector.broadcast %5 : vector<8x1xf32> to vector<8x256xf32>
    %10 = arith.mulf %8, %9 : vector<8x256xf32>
    %c0_3 = arith.constant 0 : index
    %c0_4 = arith.constant 0 : index
    %11 = vector.load %arg5[%c0_3, %c0_4] : memref<8x256xf32, #tpu.memory_space<vmem>>, vector<8x256xf32>
    tpu.vector_store %arg5[%c0_3, %c0_4], %10 {strides = array<i32>} : memref<8x256xf32, #tpu.memory_space<vmem>>, vector<8x256xf32>,
    return
  }
  func.func @transform_0(%arg0: i32, %arg1: i32) -> (i32, i32) {
    %c0_i32 = arith.constant 0 : i32
    %c0_i32_0 = arith.constant 0 : i32
    %c0_i32_1 = arith.constant 0 : i32
    return %c0_i32, %c0_i32_0 : i32, i32
  }
  func.func @transform_1(%arg0: i32, %arg1: i32) -> (i32, i32) {
    %c0_i32 = arith.constant 0 : i32
    %c0_i32_0 = arith.constant 0 : i32
    %c0_i32_1 = arith.constant 0 : i32
    return %c0_i32, %c0_i32_0 : i32, i32
  }
  func.func @transform_2(%arg0: i32, %arg1: i32) -> (i32, i32) {
    %c0_i32 = arith.constant 0 : i32
    return %arg0, %arg1 : i32, i32
  }
  func.func @transform_3(%arg0: i32, %arg1: i32) -> (i32, i32) {
    %c0_i32 = arith.constant 0 : i32
    return %arg0, %arg1 : i32, i32
  }
}

</mosaic_0001>

<bundles_post_ra>
// kernel: tpu_custom_call.1
= control target key start
LH: loop header
LB: loop body
LE: loop exit
PB: predicated region body
PF: predicated region fallthrough
CT: control target
= control target key end

     0   :  { %v79_v1 = vmov 0   ;;  %s125_s0 = inlined_call_operand.vmem [shape: f32[8,1], index: 0, kind: input, shape index: {}]   ;;  %s126_s1 = inlined_call_operand.vmem [shape: f32[8,1], index: 1, kind: input, shape index: {}]   ;;  %s127_s2 = inlined_call_operand.vmem [shape: f32[8,256], index: 2, kind: input, shape index: {}]   ;;  %s128_s3 = inlined_call_operand.hbm [shape: f32[8,256], index: 3, kind: output, shape index: {}]  }
   0x1   :  { %v17_v0 = vld [vmem:[%s125_s0] sm:$0xff]  ;;  %54 = vset.pattern.permute.xlu0 %v79_v1 }
   0x2   :  { %8 = vsyncpa [#allocation3], 0  ;;  %24 = vperm.xlu0 %54, %v17_v0   ;;  %v19_v2 = vld [vmem:[%s126_s1] sm:$0xff]  ;;  %v21_v4 = vld [vmem:[%s127_s2 + $0x8] sm:$0xff]  ;;  %s80_s20 = smov [#allocation2]  }
   0x3   :  { %v20_v3 = vld [vmem:[%s127_s2] sm:$0xff]  ;;  %s44_s0 = sshll.u32 %s80_s20, 4  ;;  %s45_s0 = int_to_ptr.vmem [resolvable:$true] %s44_s0 }
   0x4   :  { %s55_s1 = scalar_lea.vmem %s45_s0, 256  ;;  %p60_p1 = scmp.lt.s32.totalorder %s45_s0, %s45_s0 }
   0x5   :  { %p56_p0 = scmp.ne.s32.totalorder %s45_s0, %s55_s1  ;;  %p61_p2 = scmp.lt.s32.totalorder %s55_s1, %s55_s1 }
   0x6   :  { %31 = vperm.xlu0 %54, %v19_v2  }
   0x7   :  { %p62_p3 = por %p61_p2, %p60_p1 }
   0x9   :  { %p63_p4 = pnand %p62_p3, %p56_p0 }
  0x81   :  { %v25_v5 = vpop.permute.xlu0 %24 }
  0x82   :  { %v27_v6 = vsub.f32 %v20_v3, %v25_v5  ;;  %v28_v7 = vsub.f32 %v21_v4, %v25_v5 }
  0x85   :  { %v32_v8 = vpop.permute.xlu0 %31 }
  0x86   :  { %v34_v9 = vmul.f32 %v32_v8, %v27_v6  ;;  %v35_v10 = vmul.f32 %v32_v8, %v28_v7 }
  0x88   :  { %36 = vst [vmem:[#allocation2] sm:$0xff] %v34_v9  ;;  %37 = vst [vmem:[#allocation2 + $0x8] sm:$0xff] %v35_v10 }
  0x89   :  { %66 = shalt.err (!%p63_p4)
}
  0x8a   :  { %s67_s22 = scalar_lea.hbm %s128_s3, 256 }
  0x8b   :  { %p68_p5 = scmp.ne.s32.totalorder %s128_s3, %s67_s22  ;;  %p71_p6 = scmp.lt.u32.totalorder %s67_s22, %s128_s3 }
  0x8d   :  { %p73_p7 = pnand %p71_p6, %p68_p5 }
  0x8f   :  { %76 = shalt.err (!%p73_p7)
}
  0x90   :  { %47 = dma.vmem_to_hbm [thread:$0]  %s45_s0, 256, %s128_s3, [#allocation3]  }
  0x91   :  { %77 = dma.done.wait [#allocation3], 256  }
  0x92   :  { %78 = vsyncadd [#allocation3], 4294967040 }
  0x93   :  { %51 = vsyncpa [#allocation3], 1 }

</bundles_post_ra>
